<compile_context>
chip_gen: v7x
topology: tpu7x:2x2x1
jax: 0.10.0
libtpu: 0.0.40
codegen_flags: <defaults>
</compile_context>

<pallas_src>
import jax
import jax.numpy as jnp
from jax.experimental import pallas as pl
from jax.experimental.pallas import tpu as pltpu


def _round_up(x: int, m: int) -> int:
    return ((x + m - 1) // m) * m


def _pick_tile(total: int, cap: int, mult: int) -> int:
    """Largest multiple of `mult` that is <= cap and divides `total`."""
    t = max(mult, (min(cap, total) // mult) * mult)
    while total % t:
        t -= mult
    return t


# ----------------------------- Pallas kernel --------------------------------
def _linear_kernel(x_ref, w_ref, b_ref, o_ref):
    """One (tm, tn) output tile; single MXU dot over the full K.

    x_ref: (tm, K)   activation tile
    w_ref: (K,  tn)  pre-transposed weight stripe (resident across the M axis)
    b_ref: (1,  tn)  bias stripe (f32)
    o_ref: (tm, tn)  output tile
    """
    acc = jnp.dot(x_ref[...], w_ref[...], preferred_element_type=jnp.float32)
    o_ref[...] = (acc + b_ref[...]).astype(o_ref.dtype)


def head_linear(h, w_t, bias2d, out_dim, *, tm=512, tn=512,
                out_dtype=jnp.float32):
    """y = h @ w_t + bias via a weight-resident Pallas TPU matmul kernel.

    h:      (M, K)  activations (already in compute dtype)
    w_t:    (K, Np) pre-transposed, pre-padded, pre-cast weight (built once)
    bias2d: (1, Np) pre-padded f32 bias (built once)
    out_dim: number of valid output columns (Np >= out_dim)
    """
    M, K = h.shape
    Kw, Np = w_t.shape
    assert Kw == K and bias2d.shape == (1, Np) and Np % 128 == 0

    h_bytes = jnp.dtype(h.dtype).itemsize
    w_bytes = jnp.dtype(w_t.dtype).itemsize
    o_bytes = jnp.dtype(out_dtype).itemsize

    # --- tile selection -------------------------------------------------
    # tn: lane-dense multiple of 128 dividing Np; tm: multiple of 8.
    tn = _pick_tile(Np, tn, 128)
    tm = min(tm, _round_up(M, 8))

    def footprint(tm_, tn_):
        # Double-buffered working set (x tile, W stripe, bias stripe, out tile).
        return 2 * (tm_ * K * h_bytes + K * tn_ * w_bytes
                    + tn_ * 4 + tm_ * tn_ * o_bytes)

    budget = 28 * 1024 * 1024
    while footprint(tm, tn) > budget and tn > 128:
        tn = _pick_tile(Np, tn // 2, 128)
    while footprint(tm, tn) > budget and tm > 8:
        tm = max(8, _round_up(tm // 2, 8))
    # TODO(synk): for K so large that even (K x 128) stripes overflow VMEM,
    # a K grid axis with an f32 accumulator would be needed; typical LM-head
    # embed dims (<= 8192) fit the resident-K scheme used here.

    Mp = _round_up(M, tm)
    if Mp != M:
        # Only the (small, per-call) activations get padded; weight/bias were
        # padded once at init.
        h = jnp.pad(h, ((0, Mp - M), (0, 0)))

    grid = (Np // tn, Mp // tm)  # N leading (parallel / TC-sharded), M fastest

    cost = pl.CostEstimate(
        flops=2 * Mp * Np * K,
        transcendentals=0,
        bytes_accessed=((Np // tn) * Mp * K * h_bytes   # x re-read per N stripe
                        + K * Np * w_bytes              # W read exactly once
                        + Np * 4                        # bias
                        + Mp * Np * o_bytes),           # output
    )

    out = pl.pallas_call(
        _linear_kernel,
        out_shape=jax.ShapeDtypeStruct((Mp, Np), out_dtype),
        grid_spec=pltpu.PrefetchScalarGridSpec(
            num_scalar_prefetch=0,
            grid=grid,
            in_specs=[
                # x tile: block index changes with i only.
                pl.BlockSpec((tm, K), lambda j, i: (i, 0)),
                # W^T stripe: independent of i -> stays VMEM-resident while
                # the M axis sweeps (no re-DMA).
                pl.BlockSpec((K, tn), lambda j, i: (0, j)),
                # bias stripe: independent of i as well.
                pl.BlockSpec((1, tn), lambda j, i: (0, j)),
            ],
            out_specs=pl.BlockSpec((tm, tn), lambda j, i: (i, j)),
        ),
        compiler_params=pltpu.CompilerParams(
            # N parallel (sharded across v7x's two TCs -> W read once/chip),
            # M arbitrary (keeps the W stripe resident on each core).
            dimension_semantics=("parallel", "arbitrary"),
            vmem_limit_bytes=32 * 1024 * 1024,
        ),
        cost_estimate=cost,
    )(h, w_t, bias2d)

    # Slice off padding only when necessary (vocab sizes that are already
    # multiples of 128 and M multiples of tm pay nothing here).
    if (Mp, Np) != (M, out_dim):
        out = out[:M, :out_dim]
    return out


# ----------------------------- Head module ----------------------------------
class StubLM:
    """Deterministic stand-in language model: an Embedding lookup."""
    # TODO(synk): the real `lm` (e.g. a TransformerEncoder) is an opaque
    # external module; only the Head's own compute (the Linear) is kernelized.

    def __init__(self, key, vocab_size, embed_dim, dtype=jnp.float32):
        self.embed_dim = embed_dim
        # Table stored directly in the compute dtype so the lm output needs
        # no per-call cast before the head kernel.
        self.table = (jax.random.normal(key, (vocab_size, embed_dim),
                                        dtype=jnp.float32) * 0.02).astype(dtype)

    def __call__(self, tokens):
        # tokens: (B, S) int32 -> (B, S, embed_dim)
        return jnp.take(self.table, tokens, axis=0)


class Head:
    def __init__(self, key, lm, out_dim, compute_dtype=None,
                 out_dtype=jnp.float32):
        self.lm = lm
        self.in_dim = lm.embed_dim
        self.out_dim = out_dim
        self.compute_dtype = compute_dtype
        self.out_dtype = out_dtype

        kw, kb = jax.random.split(key)
        # torch.nn.Linear default init: U(-1/sqrt(in), 1/sqrt(in))
        bound = 1.0 / (self.in_dim ** 0.5)
        self.weight = jax.random.uniform(kw, (out_dim, self.in_dim),
                                         minval=-bound, maxval=bound,
                                         dtype=jnp.float32)
        self.bias = jax.random.uniform(kb, (out_dim,),
                                       minval=-bound, maxval=bound,
                                       dtype=jnp.float32)

        # One-time weight prep (no per-forward HBM passes over the weight):
        #   transpose -> pad N to a multiple of 128 -> cast to compute dtype.
        np_ = _round_up(out_dim, 128)
        w_t = jnp.asarray(self.weight.T)                       # (K, N)
        if np_ != out_dim:
            w_t = jnp.pad(w_t, ((0, 0), (0, np_ - out_dim)))
        if compute_dtype is not None:
            w_t = w_t.astype(compute_dtype)
        self.w_t = w_t                                         # (K, Np)
        bias_p = self.bias
        if np_ != out_dim:
            bias_p = jnp.pad(bias_p, (0, np_ - out_dim))
        self.bias_p = bias_p.reshape(1, np_).astype(jnp.float32)

    def __call__(self, lm_input):
        h = self.lm(lm_input)                                  # (B, S, in_dim)
        B, S, D = h.shape
        h2 = h.reshape(B * S, D)
        if self.compute_dtype is not None and h2.dtype != self.compute_dtype:
            # Ideally the lm already emits compute_dtype (see StubLM).
            h2 = h2.astype(self.compute_dtype)
        y = head_linear(h2, self.w_t, self.bias_p, self.out_dim,
                        out_dtype=self.out_dtype)
        return y.reshape(B, S, self.out_dim)


# --------------------------------- main --------------------------------------
if __name__ == "__main__":
    key = jax.random.PRNGKey(0)
    k_lm, k_head, k_tok = jax.random.split(key, 3)

    vocab_size = 64
    embed_dim = 32
    out_dim = 16
    batch, seq = 2, 8

    lm = StubLM(k_lm, vocab_size, embed_dim)
    head = Head(k_head, lm, out_dim)   # f32 path (tight-tolerance check below)

    tokens = jax.random.randint(k_tok, (batch, seq), 0, vocab_size,
                                dtype=jnp.int32)

    out = head(tokens)
    out = jax.block_until_ready(out)

    # Pure-JAX reference check of the kernelized Linear (f32 path only; a
    # bf16 compute_dtype would need a looser tolerance).
    h = lm(tokens).reshape(batch * seq, embed_dim)
    ref = (h @ head.weight.T + head.bias).reshape(batch, seq, out_dim)
    assert out.shape == (batch, seq, out_dim)
    assert jnp.allclose(out, ref, atol=1e-5, rtol=1e-5)

    print("KERNEL_OK")
</pallas_src>

<mosaic_0001>
module attributes {stable_mosaic.version = 11 : i64} {
  func.func @_linear_kernel(%arg0: i32, %arg1: i32, %arg2: memref<16x32xf32, #tpu.memory_space<vmem>>, %arg3: memref<32x128xf32, #tpu.memory_space<vmem>>, %arg4: memref<1x128xf32, #tpu.memory_space<vmem>>, %arg5: memref<16x128xf32, #tpu.memory_space<vmem>>) attributes {dimension_semantics = [#tpu.dimension_semantics<parallel>, #tpu.dimension_semantics<arbitrary>], iteration_bounds = array<i64: 1, 1>, scalar_prefetch = 0 : i64, scratch_operands = 0 : i64, tpu.core_type = #tpu.core_type<tc>, window_params = [{transform_indices = @transform_0, window_bounds = array<i64: 16, 32>}, {transform_indices = @transform_1, window_bounds = array<i64: 32, 128>}, {transform_indices = @transform_2, window_bounds = array<i64: 1, 128>}, {transform_indices = @transform_3, window_bounds = array<i64: 16, 128>}]} {
    %c0 = arith.constant 0 : index
    %c0_0 = arith.constant 0 : index
    %0 = vector.load %arg2[%c0, %c0_0] : memref<16x32xf32, #tpu.memory_space<vmem>>, vector<16x32xf32>
    %c0_1 = arith.constant 0 : index
    %c0_2 = arith.constant 0 : index
    %1 = vector.load %arg3[%c0_1, %c0_2] : memref<32x128xf32, #tpu.memory_space<vmem>>, vector<32x128xf32>
    %cst = arith.constant dense<0.000000e+00> : vector<16x128xf32>
    %2 = tpu.matmul %0, %1, %cst {dimension_numbers = #tpu.dot_dimension_numbers<[1], [0], [0], [1], [0, 0, 1, 1], [], []>} : vector<16x32xf32>, vector<32x128xf32>, vector<16x128xf32> -> vector<16x128xf32>
    %c0_3 = arith.constant 0 : index
    %c0_4 = arith.constant 0 : index
    %3 = vector.load %arg4[%c0_3, %c0_4] : memref<1x128xf32, #tpu.memory_space<vmem>>, vector<1x128xf32>
    %4 = vector.broadcast %3 : vector<1x128xf32> to vector<16x128xf32>
    %5 = arith.addf %2, %4 : vector<16x128xf32>
    %c0_5 = arith.constant 0 : index
    %c0_6 = arith.constant 0 : index
    %6 = vector.load %arg5[%c0_5, %c0_6] : memref<16x128xf32, #tpu.memory_space<vmem>>, vector<16x128xf32>
    tpu.vector_store %arg5[%c0_5, %c0_6], %5 {strides = array<i32>} : memref<16x128xf32, #tpu.memory_space<vmem>>, vector<16x128xf32>,
    return
  }
  func.func @transform_0(%arg0: i32, %arg1: i32) -> (i32, i32) {
    %c0_i32 = arith.constant 0 : i32
    %c0_i32_0 = arith.constant 0 : i32
    return %arg1, %c0_i32 : i32, i32
  }
  func.func @transform_1(%arg0: i32, %arg1: i32) -> (i32, i32) {
    %c0_i32 = arith.constant 0 : i32
    %c0_i32_0 = arith.constant 0 : i32
    return %c0_i32, %arg0 : i32, i32
  }
  func.func @transform_2(%arg0: i32, %arg1: i32) -> (i32, i32) {
    %c0_i32 = arith.constant 0 : i32
    %c0_i32_0 = arith.constant 0 : i32
    return %c0_i32, %arg0 : i32, i32
  }
  func.func @transform_3(%arg0: i32, %arg1: i32) -> (i32, i32) {
    %c0_i32 = arith.constant 0 : i32
    return %arg1, %arg0 : i32, i32
  }
}

</mosaic_0001>

<bundles_post_ra>
// kernel: tpu_custom_call.1
= control target key start
LH: loop header
LB: loop body
LE: loop exit
PB: predicated region body
PF: predicated region fallthrough
CT: control target
= control target key end

     0   :  { %8 = vsyncpa [#allocation3], 0  ;;  %s336_s0 = inlined_call_operand.hbm [shape: f32[16,32], index: 0, kind: input, shape index: {}]   ;;  %s337_s1 = inlined_call_operand.hbm [shape: f32[32,128], index: 1, kind: input, shape index: {}]   ;;  %s338_s2 = inlined_call_operand.vmem [shape: f32[1,128], index: 2, kind: input, shape index: {}]   ;;  %s339_s3 = inlined_call_operand.hbm [shape: f32[16,128], index: 3, kind: output, shape index: {}]  }
   0x1   :  { %9 = vsyncpa [#allocation6], 0 }
   0x2   :  { %10 = vsyncpa [#allocation4], 0  ;;  %s263_s12 = smov [#allocation2]   ;;  %s191_s16 = scalar_lea.hbm %s336_s0, 256 }
   0x3   :  { %s16_s13 = sshll.u32 %s263_s12, 4  ;;  %p192_p0 = scmp.ne.s32.totalorder %s336_s0, %s191_s16  ;;  %s17_s13 = int_to_ptr.vmem [resolvable:$true] %s16_s13 }
   0x4   :  { %p195_p1 = scmp.lt.u32.totalorder %s191_s16, %s336_s0 }
   0x6   :  { %p197_p2 = pnand %p195_p1, %p192_p0 }
   0x8   :  { %200 = shalt.err (!%p197_p2)
}
   0x9   :  { %s201_s21 = scalar_lea.vmem %s17_s13, 256  ;;  %p206_p4 = scmp.lt.s32.totalorder %s17_s13, %s17_s13 }
   0xa   :  { %p202_p3 = scmp.ne.s32.totalorder %s17_s13, %s201_s21  ;;  %p207_p5 = scmp.lt.s32.totalorder %s201_s21, %s201_s21 }
   0xc   :  { %p208_p6 = por %p207_p5, %p206_p4 }
   0xe   :  { %p209_p7 = pnand %p208_p6, %p202_p3 }
  0x10   :  { %212 = shalt.err (!%p209_p7)
}
  0x11   :  { %s264_s22 = smov 128   ;;  %s265_s23 = smov 8  }
  0x12   :  { %22 = dma.hbm_to_vmem [thread:$0]  %s336_s0, 256, %s17_s13, [#allocation3], %s264_s22, %s264_s22, %s265_s23  }
  0x13   :  { %s266_s26 = smov [#allocation5]   ;;  %s213_s30 = scalar_lea.hbm %s337_s1, 512 }
  0x14   :  { %s28_s27 = sshll.u32 %s266_s26, 4  ;;  %p214_p8 = scmp.ne.s32.totalorder %s337_s1, %s213_s30  ;;  %s29_s27 = int_to_ptr.vmem [resolvable:$true] %s28_s27 }
  0x15   :  { %p217_p9 = scmp.lt.u32.totalorder %s213_s30, %s337_s1 }
  0x17   :  { %p219_p10 = pnand %p217_p9, %p214_p8 }
  0x19   :  { %222 = shalt.err (!%p219_p10)
}
  0x1a   :  { %s223_s8 = scalar_lea.vmem %s29_s27, 512  ;;  %p228_p12 = scmp.lt.s32.totalorder %s29_s27, %s29_s27 }
  0x1b   :  { %p224_p11 = scmp.ne.s32.totalorder %s29_s27, %s223_s8  ;;  %p229_p13 = scmp.lt.s32.totalorder %s223_s8, %s223_s8 }
  0x1d   :  { %p230_p0 = por %p229_p13, %p228_p12 }
  0x1f   :  { %p231_p1 = pnand %p230_p0, %p224_p11 }
  0x21   :  { %234 = shalt.err (!%p231_p1)
}
  0x22   :  { %34 = dma.hbm_to_vmem [thread:$0]  %s337_s1, 512, %s29_s27, [#allocation6], %s264_s22, %s264_s22, %s265_s23  }
  0x23   :  { %257 = dma.done.wait [#allocation3], 256  }
  0x24   :  { %258 = vsyncadd [#allocation3], 4294967040 }
  0x25   :  { %259 = dma.done.wait [#allocation6], 512  }
  0x26   :  { %260 = vsyncadd [#allocation6], 4294966784  ;;  %vm56_vm0 = vcmask 261120   ;;  %v45_v0 = vld [vmem:[#allocation5] sm:$0xff]  ;;  %v46_v1 = vld [vmem:[#allocation5 + $0x8] sm:$0xff]  ;;  %s267_s11 = smov [#allocation7]  }
  0x27   :  { %v47_v2 = vld [vmem:[#allocation5 + $0x10] sm:$0xff]  ;;  %v178_v3 = vpack.c.bf16 %v46_v1, %v45_v0  ;;  %v48_v4 = vld [vmem:[#allocation5 + $0x18] sm:$0xff]  ;;  %s145_s12 = sshll.u32 %s267_s11, 4  ;;  %s146_s12 = int_to_ptr.vmem [resolvable:$true] %s145_s12 }
  0x28   :  { %v43_v5 = vld [vmem:[#allocation2] sm:$0xff]  ;;  %v182_v6 = vpack.c.bf16 %v48_v4, %v47_v2  ;;  %v44_v7 = vld [vmem:[#allocation2 + $0x8] sm:$0xff]  ;;  %s235_s13 = scalar_lea.vmem %s146_s12, 256  ;;  %p240_p3 = scmp.lt.s32.totalorder %s146_s12, %s146_s12 }
  0x29   :  { %175 = vmatprep.mubr.msk.f32.mxu0 %vm56_vm0, %v43_v5  ;;  %179 = vmatprep.subr.bf16.mxu0 %v178_v3  ;;  %v158_v8 = vld [vmem:[%s338_s2] ss:$0 sm:$0xff]  ;;  %p236_p2 = scmp.ne.s32.totalorder %s146_s12, %s235_s13  ;;  %p241_p4 = scmp.lt.s32.totalorder %s235_s13, %s235_s13 }
  0x2a   :  { %181 = vmatpush3.bf16.msra.mxu0 %v178_v3 }
  0x2b   :  { %183 = vmatprep.subr.bf16.mxu0 %v182_v6  ;;  %p242_p5 = por %p241_p4, %p240_p3 }
  0x2d   :  { %p243_p6 = pnand %p242_p5, %p236_p2 }
  0x2e   :  { %185 = vmatpush3.bf16.msra.mxu0 %v182_v6 }
  0x31   :  { %176 = vmatmul.mubr.msk.f32.vlgmr.msra.gmra.mrb[0].mxu0 %vm56_vm0, %v44_v7 }
 0x104   :  { %v177_v9 = vpop.f32.mrb[0].mxu0 }
 0x105   :  { %v135_v10 = vadd.f32 %v177_v9, %v158_v8  ;;  %v129_v11 = vpop.f32.mrb[1].mxu0 }
 0x106   :  { %v130_v12 = vadd.f32 %v158_v8, %v129_v11 }
 0x107   :  { %139 = vst [vmem:[#allocation7 + $0x8] sm:$0xff] %v135_v10 }
 0x108   :  { %138 = vst [vmem:[#allocation7] sm:$0xff] %v130_v12 }
 0x109   :  { %246 = shalt.err (!%p243_p6)
}
 0x10a   :  { %s247_s2 = scalar_lea.hbm %s339_s3, 256 }
 0x10b   :  { %p248_p7 = scmp.ne.s32.totalorder %s339_s3, %s247_s2  ;;  %p251_p8 = scmp.lt.u32.totalorder %s247_s2, %s339_s3 }
 0x10d   :  { %p253_p9 = pnand %p251_p8, %p248_p7 }
 0x10f   :  { %256 = shalt.err (!%p253_p9)
}
 0x110   :  { %151 = dma.vmem_to_hbm [thread:$0]  %s146_s12, 256, %s339_s3, [#allocation4], %s264_s22, %s264_s22, %s265_s23  }
 0x111   :  { %261 = dma.done.wait [#allocation4], 256  }
 0x112   :  { %262 = vsyncadd [#allocation4], 4294967040 }
 0x113   :  { %155 = vsyncpa [#allocation3], 1 }
 0x114   :  { %156 = vsyncpa [#allocation6], 1 }
 0x115   :  { %157 = vsyncpa [#allocation4], 1 }

</bundles_post_ra>
